<compile_context>
chip_gen: v7x
topology: tpu7x:2x2x1
jax: 0.10.0
libtpu: 0.0.40
codegen_flags: <defaults>
</compile_context>

<pallas_src>
from functools import partial

import jax
import jax.numpy as jnp
from jax.experimental import pallas as pl
from jax.experimental.pallas import tpu as pltpu


_VMEM_LIMIT = 32 * 1024 * 1024      # safe on v5e/v6e (128 MiB) and v7x (64 MiB)
_FUSED_BUDGET = 20 * 1024 * 1024    # per-step working-set budget for the fused path


# --------------------------------------------------------------------------
# Fused single-pass kernel: one whole sample per grid step.
# --------------------------------------------------------------------------
def _fused_block_kernel(xcol_ref, w_ref, bias_ref, geff_ref, beff_ref, fold_ref,
                        o_ref, *, cnt):
    """xcol_ref: (H*W, 9*Cin) bf16    w_ref: (9*Cin, Cout) bf16
       bias/geff/beff: (1, 1, Cout) f32   fold_ref: (Cout, Cout) f32 group one-hot
       o_ref: (H*W, Cout) f32."""
    # One fat MXU contraction: bf16 x bf16 -> f32 accumulation.
    y = jnp.dot(xcol_ref[...], w_ref[...], preferred_element_type=jnp.float32)
    yb = y + bias_ref[0]                                    # (H*W, Cout)

    # One-pass GroupNorm stats: per-channel sums, then fold-and-broadcast per group
    # with a tiny one-hot matmul (avoids in-kernel lane reshapes).
    s = jnp.sum(yb, axis=0, keepdims=True)                  # (1, Cout)
    ss = jnp.sum(yb * yb, axis=0, keepdims=True)            # (1, Cout)
    s_g = jnp.dot(s, fold_ref[...], preferred_element_type=jnp.float32)
    ss_g = jnp.dot(ss, fold_ref[...], preferred_element_type=jnp.float32)
    mean = s_g * (1.0 / cnt)
    var = jnp.maximum(ss_g * (1.0 / cnt) - mean * mean, 0.0)
    inv = jax.lax.rsqrt(var + 1e-5)                         # nn.GroupNorm eps

    # Folded affine (gamma/beta and optional scale/shift pre-folded in the wrapper).
    a = inv * geff_ref[0]
    b = beff_ref[0] - mean * a
    z = yb * a + b
    o_ref[...] = (z * jax.nn.sigmoid(z)).astype(o_ref.dtype)


# --------------------------------------------------------------------------
# General two-pass path.
# --------------------------------------------------------------------------
def _conv_stats_kernel(xcol_ref, w_ref, bias_ref, y_ref, sum_ref, ssq_ref):
    """Pass 1.  Grid = (N, HT); axis 1 is the stats-reduction axis.
       xcol_ref: (TH*W, 9*Cin) bf16   w_ref: (9*Cin, Cout) bf16   bias_ref: (1,1,Cout) f32
       y_ref: (TH*W, Cout) f32        sum_ref/ssq_ref: (1,1,Cout) f32 accumulators."""
    @pl.when(pl.program_id(1) == 0)
    def _init():
        sum_ref[...] = jnp.zeros_like(sum_ref)
        ssq_ref[...] = jnp.zeros_like(ssq_ref)

    y = jnp.dot(xcol_ref[...], w_ref[...], preferred_element_type=jnp.float32)
    yb = y + bias_ref[0]
    sum_ref[0] += jnp.sum(yb, axis=0, keepdims=True)
    ssq_ref[0] += jnp.sum(yb * yb, axis=0, keepdims=True)
    y_ref[...] = yb


def _norm_act_kernel(y_ref, a_ref, b_ref, o_ref):
    """Pass 2: fused per-(sample, channel) affine (GroupNorm + scale/shift) + SiLU."""
    z = y_ref[...] * a_ref[0] + b_ref[0]
    o_ref[...] = (z * jax.nn.sigmoid(z)).astype(o_ref.dtype)


def _choose_row_tile(H, W, K, Cout, budget_bytes=8 * 1024 * 1024):
    """Largest row tile (divisor of H, rows % 16 == 0) whose double-buffered pass-1
    working set fits the budget."""
    for th in range(H, 0, -1):
        if H % th:
            continue
        rows = th * W
        if rows % 16:
            continue
        step = 2 * (rows * K * 2 + rows * Cout * 4)          # bf16 in + f32 out, x2 buffers
        if step <= budget_bytes:
            return th
    return H


def block_forward(x_nchw, w, bias, gamma, beta, groups=8, scale_shift=None,
                  row_tile=None, force_two_pass=False):
    """Pallas implementation of Block.forward.  x_nchw: (N, Cin, H, W) float32."""
    N, Cin, H, W = x_nchw.shape
    Cout = w.shape[0]
    assert Cout % groups == 0
    Cg = Cout // groups
    eps = 1e-5 if x_nchw.dtype == jnp.float32 else 1e-3
    assert (H * W) % 16 == 0, "per-sample row count must be a multiple of 16"

    # ---- weight standardization, hoisted out of the kernel (weights are tiny) ----
    mu = jnp.mean(w, axis=(1, 2, 3), keepdims=True)
    var = jnp.mean((w - mu) ** 2, axis=(1, 2, 3), keepdims=True)   # unbiased=False
    w_n = (w - mu) / jax.lax.rsqrt(var + eps)   # <-- module as written (divide by rsqrt)
    # (Cout, Cin, 3, 3) -> (kh, kw, Cin, Cout) -> (9*Cin, Cout), tap-major, bf16 for MXU.
    K = 9 * Cin
    w_k = jnp.transpose(w_n, (2, 3, 1, 0)).reshape(K, Cout).astype(jnp.bfloat16)

    # ---- layout plumbing: NCHW -> NHWC, pad=1, im2col so the conv is one matmul ----
    x = jnp.transpose(x_nchw, (0, 2, 3, 1))
    xp = jnp.pad(x, ((0, 0), (1, 1), (1, 1), (0, 0)))
    taps = [xp[:, kh:kh + H, kw:kw + W, :] for kh in range(3) for kw in range(3)]
    xcol = jnp.concatenate(taps, axis=-1).astype(jnp.bfloat16).reshape(N * H * W, K)

    # ---- per-(sample, channel) affine params: gamma/beta with scale/shift folded ----
    if scale_shift is None:
        geff = jnp.broadcast_to(gamma[None, :], (N, Cout)).astype(jnp.float32)
        beff = jnp.broadcast_to(beta[None, :], (N, Cout)).astype(jnp.float32)
    else:
        scale, shift = scale_shift
        scale = scale.reshape(N, Cout).astype(jnp.float32)
        shift = shift.reshape(N, Cout).astype(jnp.float32)
        geff = gamma[None, :] * (scale + 1.0)
        beff = beta[None, :] * (scale + 1.0) + shift
    bias3 = bias.reshape(1, 1, Cout).astype(jnp.float32)
    cnt = float(H * W * Cg)

    fused_step = 2 * (H * W * K * 2 + H * W * Cout * 4)
    use_fused = (not force_two_pass) and row_tile is None and fused_step <= _FUSED_BUDGET

    if use_fused:
        # ------------------ fused single-pass path (one pallas_call) ------------------
        gid = jnp.arange(Cout) // Cg
        fold = (gid[:, None] == gid[None, :]).astype(jnp.float32)   # (Cout, Cout)
        out_flat = pl.pallas_call(
            partial(_fused_block_kernel, cnt=cnt),
            grid=(N,),
            in_specs=[
                pl.BlockSpec((H * W, K), lambda n: (n, 0)),
                pl.BlockSpec((K, Cout), lambda n: (0, 0)),
                pl.BlockSpec((1, 1, Cout), lambda n: (0, 0, 0)),
                pl.BlockSpec((1, 1, Cout), lambda n: (n, 0, 0)),
                pl.BlockSpec((1, 1, Cout), lambda n: (n, 0, 0)),
                pl.BlockSpec((Cout, Cout), lambda n: (0, 0)),
            ],
            out_specs=pl.BlockSpec((H * W, Cout), lambda n: (n, 0)),
            out_shape=jax.ShapeDtypeStruct((N * H * W, Cout), jnp.float32),
            compiler_params=pltpu.CompilerParams(
                dimension_semantics=("parallel",),
                vmem_limit_bytes=_VMEM_LIMIT),
        )(xcol, w_k, bias3, geff.reshape(N, 1, Cout), beff.reshape(N, 1, Cout), fold)
    else:
        # ----------------------------- two-pass path ----------------------------------
        TH = row_tile if row_tile is not None else _choose_row_tile(H, W, K, Cout)
        assert H % TH == 0
        HT = H // TH

        # pass 1: conv(+bias) tiles + per-(sample, channel) sum / sum-of-squares
        y_conv, sum_c, ssq_c = pl.pallas_call(
            _conv_stats_kernel,
            grid=(N, HT),
            in_specs=[
                pl.BlockSpec((TH * W, K), lambda n, h: (n * HT + h, 0)),
                pl.BlockSpec((K, Cout), lambda n, h: (0, 0)),
                pl.BlockSpec((1, 1, Cout), lambda n, h: (0, 0, 0)),
            ],
            out_specs=(
                pl.BlockSpec((TH * W, Cout), lambda n, h: (n * HT + h, 0)),
                pl.BlockSpec((1, 1, Cout), lambda n, h: (n, 0, 0)),   # accumulated over h
                pl.BlockSpec((1, 1, Cout), lambda n, h: (n, 0, 0)),   # accumulated over h
            ),
            out_shape=(
                jax.ShapeDtypeStruct((N * H * W, Cout), jnp.float32),
                jax.ShapeDtypeStruct((N, 1, Cout), jnp.float32),
                jax.ShapeDtypeStruct((N, 1, Cout), jnp.float32),
            ),
            compiler_params=pltpu.CompilerParams(
                dimension_semantics=("parallel", "arbitrary"),
                vmem_limit_bytes=_VMEM_LIMIT),
        )(xcol, w_k, bias3)

        # tiny (N, C) glue in f32: group stats -> per-channel affine (exact folding)
        sum0 = sum_c.reshape(N, Cout)
        ssq0 = ssq_c.reshape(N, Cout)
        sum_g = sum0.reshape(N, groups, Cg).sum(-1)
        ssq_g = ssq0.reshape(N, groups, Cg).sum(-1)
        mean_g = sum_g / cnt
        var_g = jnp.maximum(ssq_g / cnt - mean_g * mean_g, 0.0)   # one-pass formula clamp
        inv_g = jax.lax.rsqrt(var_g + 1e-5)                       # nn.GroupNorm eps
        mean_c = jnp.repeat(mean_g, Cg, axis=1)
        inv_c = jnp.repeat(inv_g, Cg, axis=1)
        a_c = inv_c * geff
        b_c = beff - mean_c * a_c

        # pass 2: y*a + b then SiLU
        out_flat = pl.pallas_call(
            _norm_act_kernel,
            grid=(N, HT),
            in_specs=[
                pl.BlockSpec((TH * W, Cout), lambda n, h: (n * HT + h, 0)),
                pl.BlockSpec((1, 1, Cout), lambda n, h: (n, 0, 0)),
                pl.BlockSpec((1, 1, Cout), lambda n, h: (n, 0, 0)),
            ],
            out_specs=pl.BlockSpec((TH * W, Cout), lambda n, h: (n * HT + h, 0)),
            out_shape=jax.ShapeDtypeStruct((N * H * W, Cout), jnp.float32),
            compiler_params=pltpu.CompilerParams(
                dimension_semantics=("parallel", "parallel"),
                vmem_limit_bytes=_VMEM_LIMIT),
        )(y_conv, a_c.reshape(N, 1, Cout), b_c.reshape(N, 1, Cout))

    out = out_flat.reshape(N, H, W, Cout)
    return jnp.transpose(out, (0, 3, 1, 2))                   # back to NCHW


def block_reference(x_nchw, w, bias, gamma, beta, groups=8, scale_shift=None):
    """Pure-JAX (f32) reference matching the PyTorch module as written."""
    eps = 1e-5
    mu = jnp.mean(w, axis=(1, 2, 3), keepdims=True)
    var = jnp.mean((w - mu) ** 2, axis=(1, 2, 3), keepdims=True)
    w_n = (w - mu) / jax.lax.rsqrt(var + eps)
    y = jax.lax.conv_general_dilated(
        x_nchw, w_n, window_strides=(1, 1), padding=((1, 1), (1, 1)),
        dimension_numbers=("NCHW", "OIHW", "NCHW"))
    y = y + bias[None, :, None, None]
    N, C, H, W = y.shape
    yg = y.reshape(N, groups, C // groups, H, W)
    m = jnp.mean(yg, axis=(2, 3, 4), keepdims=True)
    v = jnp.mean((yg - m) ** 2, axis=(2, 3, 4), keepdims=True)
    yg = (yg - m) * jax.lax.rsqrt(v + 1e-5)
    y = yg.reshape(N, C, H, W) * gamma[None, :, None, None] + beta[None, :, None, None]
    if scale_shift is not None:
        scale, shift = scale_shift
        y = y * (scale + 1.0) + shift
    return y * jax.nn.sigmoid(y)


if __name__ == "__main__":
    key = jax.random.PRNGKey(0)
    N, Cin, H, W = 2, 4, 16, 16
    Cout, groups = 16, 8

    k1, k2, k3, k4, k5, k6, k7 = jax.random.split(key, 7)
    x = jax.random.normal(k1, (N, Cin, H, W), jnp.float32)
    w = jax.random.normal(k2, (Cout, Cin, 3, 3), jnp.float32) * 0.1
    b = jax.random.normal(k3, (Cout,), jnp.float32) * 0.1
    gamma = 1.0 + 0.1 * jax.random.normal(k4, (Cout,), jnp.float32)
    beta = 0.1 * jax.random.normal(k5, (Cout,), jnp.float32)
    scale = 0.2 * jax.random.normal(k6, (N, Cout, 1, 1), jnp.float32)
    shift = 0.2 * jax.random.normal(k7, (N, Cout, 1, 1), jnp.float32)

    fwd = jax.jit(block_forward,
                  static_argnames=("groups", "row_tile", "force_two_pass"))

    # Tolerance: conv runs in bf16 on the MXU (f32 accumulation); after GroupNorm
    # rescaling the bf16 rounding shows up as ~1e-2 abs error on O(1) outputs.
    rtol = atol = 3e-2

    # Case 1: no scale/shift, fused single-pass path (whole sample per grid step).
    out1 = jax.block_until_ready(
        fwd(x, w, b, gamma, beta, groups=groups, scale_shift=None))
    ref1 = block_reference(x, w, b, gamma, beta, groups=groups, scale_shift=None)
    assert out1.shape == (N, Cout, H, W)
    assert bool(jnp.all(jnp.isfinite(out1)))
    assert jnp.allclose(out1, ref1, rtol=rtol, atol=atol), \
        float(jnp.max(jnp.abs(out1 - ref1)))

    # Case 2: with scale/shift, forced two-pass path with multiple row tiles
    # (exercises the cross-tile GroupNorm stat accumulation and the affine folding).
    out2 = jax.block_until_ready(
        fwd(x, w, b, gamma, beta, groups=groups,
            scale_shift=(scale, shift), row_tile=8, force_two_pass=True))
    ref2 = block_reference(x, w, b, gamma, beta, groups=groups,
                           scale_shift=(scale, shift))
    assert bool(jnp.all(jnp.isfinite(out2)))
    assert jnp.allclose(out2, ref2, rtol=rtol, atol=atol), \
        float(jnp.max(jnp.abs(out2 - ref2)))

    print("KERNEL_OK")
</pallas_src>

<mosaic_0001>
module attributes {stable_mosaic.version = 11 : i64} {
  func.func @_fused_block_kernel(%arg0: i32, %arg1: memref<256x36xbf16, #tpu.memory_space<vmem>>, %arg2: memref<36x16xbf16, #tpu.memory_space<vmem>>, %arg3: memref<1x1x16xf32, #tpu.memory_space<vmem>>, %arg4: memref<1x1x16xf32, #tpu.memory_space<vmem>>, %arg5: memref<1x1x16xf32, #tpu.memory_space<vmem>>, %arg6: memref<16x16xf32, #tpu.memory_space<vmem>>, %arg7: memref<256x16xf32, #tpu.memory_space<vmem>>) attributes {dimension_semantics = [#tpu.dimension_semantics<parallel>], iteration_bounds = array<i64: 2>, scalar_prefetch = 0 : i64, scratch_operands = 0 : i64, tpu.core_type = #tpu.core_type<tc>, window_params = [{transform_indices = @transform_0, window_bounds = array<i64: 256, 36>}, {pipeline_mode = #tpu.pipeline_mode<synchronous>, transform_indices = @transform_1, window_bounds = array<i64: 36, 16>}, {pipeline_mode = #tpu.pipeline_mode<synchronous>, transform_indices = @transform_2, window_bounds = array<i64: 1, 1, 16>}, {transform_indices = @transform_3, window_bounds = array<i64: 1, 1, 16>}, {transform_indices = @transform_4, window_bounds = array<i64: 1, 1, 16>}, {pipeline_mode = #tpu.pipeline_mode<synchronous>, transform_indices = @transform_5, window_bounds = array<i64: 16, 16>}, {transform_indices = @transform_6, window_bounds = array<i64: 256, 16>}]} {
    %c0 = arith.constant 0 : index
    %c0_0 = arith.constant 0 : index
    %0 = vector.load %arg1[%c0, %c0_0] : memref<256x36xbf16, #tpu.memory_space<vmem>>, vector<256x36xbf16>
    %c0_1 = arith.constant 0 : index
    %c0_2 = arith.constant 0 : index
    %1 = vector.load %arg2[%c0_1, %c0_2] : memref<36x16xbf16, #tpu.memory_space<vmem>>, vector<36x16xbf16>
    %cst = arith.constant dense<0.000000e+00> : vector<256x16xf32>
    %2 = tpu.matmul %0, %1, %cst {dimension_numbers = #tpu.dot_dimension_numbers<[1], [0], [0], [1], [0, 0, 1, 1], [], []>} : vector<256x36xbf16>, vector<36x16xbf16>, vector<256x16xf32> -> vector<256x16xf32>
    %c0_3 = arith.constant 0 : index
    %c0_4 = arith.constant 0 : index
    %c0_5 = arith.constant 0 : index
    %3 = vector.load %arg3[%c0_3, %c0_4, %c0_5] : memref<1x1x16xf32, #tpu.memory_space<vmem>>, vector<1x1x16xf32>
    %4 = vector.shape_cast %3 : vector<1x1x16xf32> to vector<1x16xf32>
    %5 = vector.broadcast %4 : vector<1x16xf32> to vector<256x16xf32>
    %6 = arith.addf %2, %5 : vector<256x16xf32>
    %cst_6 = arith.constant dense<0.000000e+00> : vector<16xf32>
    %7 = vector.multi_reduction <add>, %6, %cst_6 [0] : vector<256x16xf32> to vector<16xf32>
    %8 = vector.shape_cast %7 : vector<16xf32> to vector<1x16xf32>
    %9 = arith.mulf %6, %6 : vector<256x16xf32>
    %cst_7 = arith.constant dense<0.000000e+00> : vector<16xf32>
    %10 = vector.multi_reduction <add>, %9, %cst_7 [0] : vector<256x16xf32> to vector<16xf32>
    %11 = vector.shape_cast %10 : vector<16xf32> to vector<1x16xf32>
    %c0_8 = arith.constant 0 : index
    %c0_9 = arith.constant 0 : index
    %12 = vector.load %arg6[%c0_8, %c0_9] : memref<16x16xf32, #tpu.memory_space<vmem>>, vector<16x16xf32>
    %cst_10 = arith.constant dense<0.000000e+00> : vector<1x16xf32>
    %13 = tpu.matmul %8, %12, %cst_10 {dimension_numbers = #tpu.dot_dimension_numbers<[1], [0], [0], [1], [0, 0, 1, 1], [], []>} : vector<1x16xf32>, vector<16x16xf32>, vector<1x16xf32> -> vector<1x16xf32>
    %c0_11 = arith.constant 0 : index
    %c0_12 = arith.constant 0 : index
    %14 = vector.load %arg6[%c0_11, %c0_12] : memref<16x16xf32, #tpu.memory_space<vmem>>, vector<16x16xf32>
    %cst_13 = arith.constant dense<0.000000e+00> : vector<1x16xf32>
    %15 = tpu.matmul %11, %14, %cst_13 {dimension_numbers = #tpu.dot_dimension_numbers<[1], [0], [0], [1], [0, 0, 1, 1], [], []>} : vector<1x16xf32>, vector<16x16xf32>, vector<1x16xf32> -> vector<1x16xf32>
    %cst_14 = arith.constant 0.001953125 : f32
    %16 = vector.broadcast %cst_14 : f32 to vector<1x16xf32>
    %17 = arith.mulf %13, %16 : vector<1x16xf32>
    %cst_15 = arith.constant 0.001953125 : f32
    %18 = vector.broadcast %cst_15 : f32 to vector<1x16xf32>
    %19 = arith.mulf %15, %18 : vector<1x16xf32>
    %20 = arith.mulf %17, %17 : vector<1x16xf32>
    %21 = arith.subf %19, %20 : vector<1x16xf32>
    %cst_16 = arith.constant 0.000000e+00 : f32
    %22 = vector.broadcast %cst_16 : f32 to vector<1x16xf32>
    %23 = arith.maximumf %21, %22 : vector<1x16xf32>
    %cst_17 = arith.constant 9.99999974E-6 : f32
    %24 = vector.broadcast %cst_17 : f32 to vector<1x16xf32>
    %25 = arith.addf %23, %24 : vector<1x16xf32>
    %26 = math.rsqrt %25 : vector<1x16xf32>
    %c0_18 = arith.constant 0 : index
    %c0_19 = arith.constant 0 : index
    %c0_20 = arith.constant 0 : index
    %27 = vector.load %arg4[%c0_18, %c0_19, %c0_20] : memref<1x1x16xf32, #tpu.memory_space<vmem>>, vector<1x1x16xf32>
    %28 = vector.shape_cast %27 : vector<1x1x16xf32> to vector<1x16xf32>
    %29 = arith.mulf %26, %28 : vector<1x16xf32>
    %c0_21 = arith.constant 0 : index
    %c0_22 = arith.constant 0 : index
    %c0_23 = arith.constant 0 : index
    %30 = vector.load %arg5[%c0_21, %c0_22, %c0_23] : memref<1x1x16xf32, #tpu.memory_space<vmem>>, vector<1x1x16xf32>
    %31 = vector.shape_cast %30 : vector<1x1x16xf32> to vector<1x16xf32>
    %32 = arith.mulf %17, %29 : vector<1x16xf32>
    %33 = arith.subf %31, %32 : vector<1x16xf32>
    %34 = vector.broadcast %29 : vector<1x16xf32> to vector<256x16xf32>
    %35 = arith.mulf %6, %34 : vector<256x16xf32>
    %36 = vector.broadcast %33 : vector<1x16xf32> to vector<256x16xf32>
    %37 = arith.addf %35, %36 : vector<256x16xf32>
    %38 = arith.negf %37 : vector<256x16xf32>
    %39 = math.exp %38 : vector<256x16xf32>
    %cst_24 = arith.constant 1.000000e+00 : f32
    %40 = vector.broadcast %cst_24 : f32 to vector<256x16xf32>
    %41 = arith.addf %40, %39 : vector<256x16xf32>
    %42 = arith.divf %40, %41 : vector<256x16xf32>
    %43 = arith.mulf %37, %42 : vector<256x16xf32>
    %c0_25 = arith.constant 0 : index
    %c0_26 = arith.constant 0 : index
    %44 = vector.load %arg7[%c0_25, %c0_26] : memref<256x16xf32, #tpu.memory_space<vmem>>, vector<256x16xf32>
    tpu.vector_store %arg7[%c0_25, %c0_26], %43 {strides = array<i32>} : memref<256x16xf32, #tpu.memory_space<vmem>>, vector<256x16xf32>,
    return
  }
  func.func @transform_0(%arg0: i32) -> (i32, i32) {
    %c0_i32 = arith.constant 0 : i32
    %c0_i32_0 = arith.constant 0 : i32
    return %arg0, %c0_i32 : i32, i32
  }
  func.func @transform_1(%arg0: i32) -> (i32, i32) {
    %c0_i32 = arith.constant 0 : i32
    %c0_i32_0 = arith.constant 0 : i32
    %c0_i32_1 = arith.constant 0 : i32
    return %c0_i32, %c0_i32_0 : i32, i32
  }
  func.func @transform_2(%arg0: i32) -> (i32, i32, i32) {
    %c0_i32 = arith.constant 0 : i32
    %c0_i32_0 = arith.constant 0 : i32
    %c0_i32_1 = arith.constant 0 : i32
    %c0_i32_2 = arith.constant 0 : i32
    return %c0_i32, %c0_i32_0, %c0_i32_1 : i32, i32, i32
  }
  func.func @transform_3(%arg0: i32) -> (i32, i32, i32) {
    %c0_i32 = arith.constant 0 : i32
    %c0_i32_0 = arith.constant 0 : i32
    %c0_i32_1 = arith.constant 0 : i32
    return %arg0, %c0_i32, %c0_i32_0 : i32, i32, i32
  }
  func.func @transform_4(%arg0: i32) -> (i32, i32, i32) {
    %c0_i32 = arith.constant 0 : i32
    %c0_i32_0 = arith.constant 0 : i32
    %c0_i32_1 = arith.constant 0 : i32
    return %arg0, %c0_i32, %c0_i32_0 : i32, i32, i32
  }
  func.func @transform_5(%arg0: i32) -> (i32, i32) {
    %c0_i32 = arith.constant 0 : i32
    %c0_i32_0 = arith.constant 0 : i32
    %c0_i32_1 = arith.constant 0 : i32
    return %c0_i32, %c0_i32_0 : i32, i32
  }
  func.func @transform_6(%arg0: i32) -> (i32, i32) {
    %c0_i32 = arith.constant 0 : i32
    %c0_i32_0 = arith.constant 0 : i32
    return %arg0, %c0_i32 : i32, i32
  }
}

</mosaic_0001>

<bundles_post_ra>
// kernel: block_forward.1
= control target key start
LH: loop header
LB: loop body
LE: loop exit
PB: predicated region body
PF: predicated region fallthrough
CT: control target
= control target key end

     0   :  { %s1750_s21 = smov 0   ;;  %s2400_s0 = inlined_call_operand.vmem [shape: bf16[512,36], index: 0, kind: input, shape index: {}]   ;;  %s2401_s1 = inlined_call_operand.vmem [shape: bf16[36,16], index: 1, kind: input, shape index: {}]   ;;  %s2402_s2 = inlined_call_operand.vmem [shape: f32[1,1,16], index: 2, kind: input, shape index: {}]   ;;  %s2403_s3 = inlined_call_operand.vmem [shape: f32[2,1,16], index: 3, kind: input, shape index: {}]   ;;  %s2404_s4 = inlined_call_operand.vmem [shape: f32[2,1,16], index: 4, kind: input, shape index: {}]   ;;  %s2405_s5 = inlined_call_operand.vmem [shape: f32[16,16], index: 5, kind: input, shape index: {}]   ;;  %s2406_s6 = inlined_call_operand.vmem [shape: f32[512,16], index: 6, kind: output, shape index: {}]  }
   0x1 LB: > { %s1756_s22 = sadd.s32 4294967295, %s1710_s21   ;;  %p1376_p0 = scmp.ge.s32.totalorder %s1710_s21, 1  ;;  %s1710_s21 = sphi %s1750_s21, %s16_s21  }
   0x2   : > { %p229_p1 = scmp.lt.s32.totalorder %s1710_s21, 3 }
   0x4   : > { %p230_p2 = pnand %p1376_p0, %p229_p1 }
   0x6   : > { %233 = sbr.rel (%p230_p2) target bundleno = 653 (0x28d), region = 44 }
   0xd   : > { %v1555_v0 = vld [vmem:[%s2401_s1] sm:$0xff]   ;;  %v1556_v1 = vld [vmem:[%s2401_s1 + $0x8] sm:$0xff]   ;;  %s1377_s27 = sshll.u32 %s1756_s22, 5  ;;  %v1557_v2 = vld [vmem:[%s2401_s1 + $0x10] ss:$0 sps:$4 sm:$0x33]  }
   0xe   : > { %1478 = vmatprep.subr.bf16.mxu0 %v1555_v0  ;;  %p266_p3 = scmp.lt.s32.totalorder %s1377_s27, 63  ;;  %1536 = vmatprep.subr.bf16.mxu1 %v1555_v0  ;;  %vm472_vm0 = vcmask 1041408   ;;  %vm423_vm1 = vcmask 293888   ;;  %v808_v20 = vld [vmem:[%s2405_s5] sm:$0xff]  ;;  %v809_v21 = vld [vmem:[%s2405_s5 + $0x8] sm:$0xff]  ;;  %v1712_v23 = vmov 0.0|0.0  }
   0xf   : > { %1479 = vmatpush3.bf16.msra.mxu0 %v1555_v0  ;;  %1539 = vmatpush3.bf16.msra.mxu1 %v1555_v0  ;;  %v474_v3 = vsel %vm472_vm0, %v1557_v2, 0  ;;  %v1816_v22 = vpack.c.bf16 %v809_v21, %v808_v20  ;;  %vm1713_vm2 = vmmov 0   ;;  %v1714_v24 = vmov 0.0   ;;  %v1824_v25 = vld [vmem:[%s2402_s2] ss:$0 sm:$0xff]  ;;  %p271_p4 = scmp.lt.s32.totalorder %s1756_s22, 1 }
  0x10   : > { %1480 = vmatprep.subr.bf16.mxu0 %v1556_v1  ;;  %s2414_s27 = smov (!%p266_p3, %s1377_s27), 63  ;;  %1537 = vmatprep.subr.bf16.mxu1 %v1556_v1  ;;  %vm637_vm3 = vcmask 130048  }
  0x11   : > { %s1378_s30 = sshll.u32 %s2414_s27, 2  ;;  %s2416_s22 = smov (!%p271_p4, %s1756_s22), 1 }
  0x12   : > { %s1776_s9 = scalar_lea.vmem %s2400_s0, %s1378_s30  ;;  %s273_s18 = scalar_lea.vmem %s2403_s3, %s2416_s22 }
  0x13   : > { %1481 = vmatpush3.bf16.msra.mxu0 %v1556_v1  ;;  %1540 = vmatpush3.bf16.msra.mxu1 %v1556_v1  ;;  %v1558_v4 = vld [vmem:[%s1776_s9] sm:$0xff]   ;;  %v1559_v5 = vld [vmem:[%s1776_s9 + $0x8] sm:$0xff]   ;;  %v1560_v6 = vld [vmem:[%s1776_s9 + $0x10] sm:$0xff]   ;;  %s276_s23 = scalar_lea.vmem %s2404_s4, %s2416_s22  ;;  %s1380_s22 = sshll.u32 %s2414_s27, 3 }
  0x14   : > { %1542 = vmatprep.subr.msk.bf16.mxu0 %vm472_vm0, %v1557_v2  ;;  %1543 = vmatprep.subr.msk.bf16.mxu1 %vm472_vm0, %v1557_v2  ;;  %v1561_v7 = vld [vmem:[%s1776_s9 + $0x18] sm:$0xff]   ;;  %v1562_v8 = vld [vmem:[%s1776_s9 + $0x20] sm:$0xff]   ;;  %v1568_v9 = vld [vmem:[%s1776_s9 + $0x50] sm:$0xff]   ;;  %s2287_s26 = scalar_lea.vmem %s2406_s6, %s1380_s22 }
  0x15   : > { %1484 = vmatprep.mubr.msk.bf16.mxu0 %vm423_vm1, %v1558_v4  ;;  %v1569_v10 = vld [vmem:[%s1776_s9 + $0x58] sm:$0xff]   ;;  %1504 = vmatprep.mubr.msk.bf16.mxu1 %vm423_vm1, %v1568_v9  ;;  %v1570_v11 = vld [vmem:[%s1776_s9 + $0x60] sm:$0xff]   ;;  %v1571_v12 = vld [vmem:[%s1776_s9 + $0x68] sm:$0xff]  }
  0x16   : > { %v1563_v13 = vld [vmem:[%s1776_s9 + $0x28] sm:$0xff]   ;;  %v1572_v14 = vld [vmem:[%s1776_s9 + $0x70] sm:$0xff]   ;;  %v1573_v16 = vld [vmem:[%s1776_s9 + $0x78] sm:$0xff]  }
  0x17   : > { %1483 = vmatpush3.bf16.msra.mxu0 %v474_v3  ;;  %1541 = vmatpush3.bf16.msra.mxu1 %v474_v3  ;;  %v1564_v15 = vld [vmem:[%s1776_s9 + $0x30] sm:$0xff]   ;;  %v1565_v17 = vld [vmem:[%s1776_s9 + $0x38] sm:$0xff]   ;;  %v1566_v18 = vld [vmem:[%s1776_s9 + $0x40] sm:$0xff]  }
  0x18   : > { %v1567_v19 = vld [vmem:[%s1776_s9 + $0x48] sm:$0xff]   ;;  %1530 = vmatprep.subr.bf16.mxu1 %v1712_v23 }
  0x1a   : > { %1485 = vmatmul.mubr.msk.bf16.vlgmr.msra.gmra.mrb[0].mxu0 %vm423_vm1, %v1559_v5  ;;  %1505 = vmatmul.mubr.msk.bf16.vlgmr.msra.gmra.mrb[0].mxu1 %vm423_vm1, %v1569_v10 }
  0x1b   : > { %1488 = vmatprep.mubr.msk.bf16.mxu0 %vm423_vm1, %v1560_v6  ;;  %1508 = vmatprep.mubr.msk.bf16.mxu1 %vm423_vm1, %v1570_v11 }
  0x1c   : > { %1532 = vmatpush3.bf16.msra.mxu1 %v1816_v22 }
  0x1d   : > { %1533 = vmatprep.subr.bf16.mxu1 %v1712_v23 }
  0x22   : > { %1489 = vmatmul.mubr.msk.bf16.gmra.mrb[4].mxu0 %vm423_vm1, %v1561_v7  ;;  %1509 = vmatmul.mubr.msk.bf16.gmra.mrb[4].mxu1 %vm423_vm1, %v1571_v12 }
  0x23   : > { %1492 = vmatprep.mubr.msk.bf16.mxu0 %vm423_vm1, %v1562_v8  ;;  %1512 = vmatprep.mubr.msk.bf16.mxu1 %vm423_vm1, %v1572_v14 }
  0x2a   : > { %1493 = vmatmul.mubr.msk.bf16.gmra.mrb[8].mxu0 %vm423_vm1, %v1563_v13  ;;  %1513 = vmatmul.mubr.msk.bf16.gmra.mrb[8].mxu1 %vm423_vm1, %v1573_v16 }
  0x2b   : > { %1496 = vmatprep.mubr.msk.bf16.mxu0 %vm423_vm1, %v1564_v15  ;;  %1520 = vmatprep.mubr.msk.f32.mxu1 %vm1713_vm2, %v1714_v24 }
  0x32   : > { %1497 = vmatmul.mubr.msk.bf16.gmra.mrb[12].mxu0 %vm423_vm1, %v1565_v17 }
  0x33   : > { %1500 = vmatprep.mubr.msk.bf16.mxu0 %vm423_vm1, %v1566_v18 }
  0x3a   : > { %1501 = vmatmul.mubr.msk.bf16.gmra.mrb[16].mxu0 %vm423_vm1, %v1567_v19 }
  0xed   : > { %v1486_v26 = vpop.f32.mrb[0].mxu0  ;;  %v1848_v40 = vpop.f32.mrb[0].mxu1 }
  0xee   : > { %v510_v27 = vpop.f32.mrb[1].mxu0  ;;  %v1827_v28 = vadd.f32 %v1486_v26, %v1824_v25  ;;  %v1856_v46 = vpop.f32.mrb[1].mxu1 }
  0xef   : > { %v1830_v29 = vadd.f32 %v1824_v25, %v510_v27  ;;  %v1487_v30 = vpop.f32.mrb[2].mxu0  ;;  %v1858_v50 = vpop.f32.mrb[2].mxu1 }
  0xf0   : > { %v513_v31 = vpop.f32.mrb[3].mxu0  ;;  %v1835_v33 = vadd.f32 %v1487_v30, %v1824_v25  ;;  %v709_v35 = vmul.f32 %v1827_v28, %v1827_v28  ;;  %v641_v41 = vsel %vm637_vm3, %v1827_v28, 0.0  ;;  %v1866_v55 = vpop.f32.mrb[3].mxu1 }
  0xf1   : > { %v707_v32 = vmul.f32 %v1830_v29, %v1830_v29  ;;  %v1838_v34 = vadd.f32 %v1824_v25, %v513_v31  ;;  %v638_v36 = vsel %vm637_vm3, %v1830_v29, 0.0 }
  0xf2   : > { %v710_v43 = vmul.f32 %v1835_v33, %v1835_v33  ;;  %v742_v51 = vsel %vm637_vm3, %v709_v35, 0.0  ;;  %v643_v52 = vsel %vm637_vm3, %v1835_v33, 0.0 }
  0xf3   : > { %v639_v37 = vsel %vm637_vm3, %v1838_v34, 0.0  ;;  %v708_v38 = vmul.f32 %v1838_v34, %v1838_v34  ;;  %v739_v42 = vsel %vm637_vm3, %v707_v32, 0.0 }
  0xf4   : > { %v640_v39 = vadd.f32 %v639_v37, %v638_v36  ;;  %v744_v60 = vsel %vm637_vm3, %v710_v43, 0.0 }
  0xf5   : > { %v740_v44 = vsel %vm637_vm3, %v708_v38, 0.0  ;;  %v1490_v45 = vpop.f32.mrb[4].mxu0  ;;  %v1889_v9 = vpop.f32.mrb[4].mxu1 }
  0xf6   : > { %v642_v47 = vadd.f32 %v641_v41, %v640_v39  ;;  %v741_v48 = vadd.f32 %v740_v44, %v739_v42  ;;  %v526_v49 = vpop.f32.mrb[5].mxu0  ;;  %v1869_v57 = vadd.f32 %v1490_v45, %v1824_v25  ;;  %v1893_v12 = vpop.f32.mrb[5].mxu1 }
  0xf7   : > { %v1864_v53 = vadd.f32 %v1824_v25, %v526_v49  ;;  %v1491_v54 = vpop.f32.mrb[6].mxu0  ;;  %v1898_v17 = vpop.f32.mrb[6].mxu1 }
  0xf8   : > { %v743_v56 = vadd.f32 %v742_v51, %v741_v48  ;;  %v644_v58 = vadd.f32 %v643_v52, %v642_v47  ;;  %v529_v59 = vpop.f32.mrb[7].mxu0  ;;  %v1880_v2 = vadd.f32 %v1491_v54, %v1824_v25  ;;  %v713_v5 = vmul.f32 %v1869_v57, %v1869_v57  ;;  %v1905_v23 = vpop.f32.mrb[7].mxu1 }
  0xf9   : > { %v645_v61 = vsel %vm637_vm3, %v1864_v53, 0.0  ;;  %v711_v62 = vmul.f32 %v1864_v53, %v1864_v53  ;;  %v1877_v63 = vadd.f32 %v1824_v25, %v529_v59  ;;  %v649_v10 = vsel %vm637_vm3, %v1869_v57, 0.0 }
  0xfa   : > { %v646_v0 = vadd.f32 %v645_v61, %v644_v58  ;;  %v745_v1 = vadd.f32 %v744_v60, %v743_v56  ;;  %v714_v13 = vmul.f32 %v1880_v2, %v1880_v2  ;;  %v651_v18 = vsel %vm637_vm3, %v1880_v2, 0.0 }
  0xfb   : > { %v746_v3 = vsel %vm637_vm3, %v711_v62, 0.0  ;;  %v647_v4 = vsel %vm637_vm3, %v1877_v63, 0.0  ;;  %v712_v8 = vmul.f32 %v1877_v63, %v1877_v63  ;;  %v750_v26 = vsel %vm637_vm3, %v713_v5, 0.0 }
  0xfc   : > { %v747_v6 = vadd.f32 %v746_v3, %v745_v1  ;;  %v648_v7 = vadd.f32 %v647_v4, %v646_v0  ;;  %v752_v38 = vsel %vm637_vm3, %v714_v13, 0.0 }
  0xfd   : > { %v1494_v11 = vpop.f32.mrb[8].mxu0  ;;  %v748_v15 = vsel %vm637_vm3, %v712_v8, 0.0  ;;  %v1929_v49 = vpop.f32.mrb[8].mxu1 }
  0xfe   : > { %v650_v14 = vadd.f32 %v649_v10, %v648_v7  ;;  %v542_v16 = vpop.f32.mrb[9].mxu0  ;;  %v749_v19 = vadd.f32 %v748_v15, %v747_v6  ;;  %v1909_v27 = vadd.f32 %v1494_v11, %v1824_v25  ;;  %v1934_v58 = vpop.f32.mrb[9].mxu1 }
  0xff   : > { %v1903_v20 = vadd.f32 %v1824_v25, %v542_v16  ;;  %v1495_v21 = vpop.f32.mrb[10].mxu0  ;;  %v1938_v62 = vpop.f32.mrb[10].mxu1 }
 0x100   : > { %v652_v30 = vadd.f32 %v651_v18, %v650_v14  ;;  %v545_v31 = vpop.f32.mrb[11].mxu0  ;;  %v751_v32 = vadd.f32 %v750_v26, %v749_v19  ;;  %v1920_v41 = vadd.f32 %v1495_v21, %v1824_v25  ;;  %v717_v47 = vmul.f32 %v1909_v27, %v1909_v27  ;;  %v1945_v5 = vpop.f32.mrb[11].mxu1 }
 0x101   : > { %v653_v35 = vsel %vm637_vm3, %v1903_v20, 0.0  ;;  %v715_v36 = vmul.f32 %v1903_v20, %v1903_v20  ;;  %v1916_v37 = vadd.f32 %v1824_v25, %v545_v31  ;;  %v657_v51 = vsel %vm637_vm3, %v1909_v27, 0.0 }
 0x102   : > { %v654_v39 = vadd.f32 %v653_v35, %v652_v30  ;;  %v753_v42 = vadd.f32 %v752_v38, %v751_v32  ;;  %v718_v59 = vmul.f32 %v1920_v41, %v1920_v41  ;;  %v659_v0 = vsel %vm637_vm3, %v1920_v41, 0.0 }
 0x103   : > { %v754_v43 = vsel %vm637_vm3, %v715_v36, 0.0  ;;  %v655_v44 = vsel %vm637_vm3, %v1916_v37, 0.0  ;;  %v716_v45 = vmul.f32 %v1916_v37, %v1916_v37  ;;  %v758_v6 = vsel %vm637_vm3, %v717_v47, 0.0 }
 0x104   : > { %v656_v48 = vadd.f32 %v655_v44, %v654_v39  ;;  %v755_v52 = vadd.f32 %v754_v43, %v753_v42  ;;  %v760_v16 = vsel %vm637_vm3, %v718_v59, 0.0 }
 0x105   : > { %v756_v54 = vsel %vm637_vm3, %v716_v45, 0.0  ;;  %v1498_v56 = vpop.f32.mrb[12].mxu0 }
 0x106   : > { %v658_v60 = vadd.f32 %v657_v51, %v656_v48  ;;  %v558_v61 = vpop.f32.mrb[13].mxu0  ;;  %v757_v1 = vadd.f32 %v756_v54, %v755_v52  ;;  %v1949_v7 = vadd.f32 %v1498_v56, %v1824_v25 }
 0x107   : > { %v1943_v3 = vadd.f32 %v1824_v25, %v558_v61  ;;  %v1499_v4 = vpop.f32.mrb[14].mxu0  ;;  %v1985_v61 = vadd.f32 %v1824_v25, %v1856_v46 }
 0x108   : > { %v660_v8 = vadd.f32 %v659_v0, %v658_v60  ;;  %v561_v10 = vpop.f32.mrb[15].mxu0  ;;  %v759_v11 = vadd.f32 %v758_v6, %v757_v1  ;;  %v1960_v19 = vadd.f32 %v1499_v4, %v1824_v25  ;;  %v721_v32 = vmul.f32 %v1949_v7, %v1949_v7 }
 0x109   : > { %v661_v13 = vsel %vm637_vm3, %v1943_v3, 0.0  ;;  %v719_v14 = vmul.f32 %v1943_v3, %v1943_v3  ;;  %v1956_v15 = vadd.f32 %v1824_v25, %v561_v10  ;;  %v665_v36 = vsel %vm637_vm3, %v1949_v7, 0.0 }
 0x10a   : > { %v662_v18 = vadd.f32 %v661_v13, %v660_v8  ;;  %v761_v21 = vadd.f32 %v760_v16, %v759_v11  ;;  %v722_v43 = vmul.f32 %v1960_v19, %v1960_v19  ;;  %v667_v47 = vsel %vm637_vm3, %v1960_v19, 0.0 }
 0x10b   : > { %v762_v26 = vsel %vm637_vm3, %v719_v14, 0.0  ;;  %v663_v30 = vsel %vm637_vm3, %v1956_v15, 0.0  ;;  %v720_v31 = vmul.f32 %v1956_v15, %v1956_v15  ;;  %v766_v54 = vsel %vm637_vm3, %v721_v32, 0.0 }
 0x10c   : > { %v664_v35 = vadd.f32 %v663_v30, %v662_v18  ;;  %v763_v38 = vadd.f32 %v762_v26, %v761_v21  ;;  %v768_v8 = vsel %vm637_vm3, %v722_v43, 0.0  ;;  %v727_v32 = vmul.f32 %v1985_v61, %v1985_v61 }
 0x10d   : > { %v764_v39 = vsel %vm637_vm3, %v720_v31, 0.0  ;;  %v1502_v42 = vpop.f32.mrb[16].mxu0  ;;  %v677_v43 = vsel %vm637_vm3, %v1985_v61, 0.0 }
 0x10e   : > { %v666_v44 = vadd.f32 %v665_v36, %v664_v35  ;;  %v574_v45 = vpop.f32.mrb[17].mxu0  ;;  %v765_v48 = vadd.f32 %v764_v39, %v763_v38  ;;  %v1981_v56 = vadd.f32 %v1502_v42, %v1824_v25  ;;  %v2014_v38 = vadd.f32 %v1824_v25, %v1866_v55 }
 0x10f   : > { %v1977_v51 = vadd.f32 %v1824_v25, %v574_v45  ;;  %v1503_v52 = vpop.f32.mrb[18].mxu0  ;;  %v2023_v45 = vadd.f32 %v1848_v40, %v1824_v25  ;;  %v2028_v55 = vadd.f32 %v1858_v50, %v1824_v25 }
 0x110   : > { %v668_v59 = vadd.f32 %v667_v47, %v666_v44  ;;  %v577_v60 = vpop.f32.mrb[19].mxu0  ;;  %v767_v0 = vadd.f32 %v766_v54, %v765_v48  ;;  %v1996_v11 = vadd.f32 %v1503_v52, %v1824_v25  ;;  %v725_v18 = vmul.f32 %v1981_v56, %v1981_v56 }
 0x111   : > { %v669_v1 = vsel %vm637_vm3, %v1977_v51, 0.0  ;;  %v723_v4 = vmul.f32 %v1977_v51, %v1977_v51  ;;  %v1992_v6 = vadd.f32 %v1824_v25, %v577_v60  ;;  %v673_v26 = vsel %vm637_vm3, %v1981_v56, 0.0 }
 0x112   : > { %v670_v10 = vadd.f32 %v669_v1, %v668_v59  ;;  %v769_v13 = vadd.f32 %v768_v8, %v767_v0  ;;  %v726_v35 = vmul.f32 %v1996_v11, %v1996_v11  ;;  %v675_v39 = vsel %vm637_vm3, %v1996_v11, 0.0 }
 0x113   : > { %v770_v46 = vsel %vm637_vm3, %v723_v4, 0.0  ;;  %v671_v14 = vsel %vm637_vm3, %v1992_v6, 0.0  ;;  %v724_v16 = vmul.f32 %v1992_v6, %v1992_v6  ;;  %v774_v44 = vsel %vm637_vm3, %v725_v18, 0.0 }
 0x114   : > { %v672_v21 = vadd.f32 %v671_v14, %v670_v10  ;;  %v771_v30 = vadd.f32 %v770_v46, %v769_v13  ;;  %v778_v52 = vsel %vm637_vm3, %v727_v32, 0.0  ;;  %v776_v54 = vsel %vm637_vm3, %v726_v35, 0.0 }
 0x115   : > { %v772_v31 = vsel %vm637_vm3, %v724_v16, 0.0  ;;  %v728_v60 = vmul.f32 %v2014_v38, %v2014_v38  ;;  %v2035_v0 = vadd.f32 %v1824_v25, %v1893_v12  ;;  %v679_v1 = vsel %vm637_vm3, %v2014_v38, 0.0 }
 0x116   : > { %v674_v36 = vadd.f32 %v673_v26, %v672_v21  ;;  %v773_v42 = vadd.f32 %v772_v31, %v771_v30  ;;  %v729_v4 = vmul.f32 %v2023_v45, %v2023_v45  ;;  %v681_v50 = vsel %vm637_vm3, %v2023_v45, 0.0 }
 0x117   : > { %v730_v13 = vmul.f32 %v2028_v55, %v2028_v55  ;;  %v780_v14 = vsel %vm637_vm3, %v728_v60, 0.0  ;;  %v731_v12 = vmul.f32 %v2035_v0, %v2035_v0  ;;  %v2050_v16 = vadd.f32 %v1824_v25, %v1905_v23 }
 0x118   : > { %v676_v47 = vadd.f32 %v675_v39, %v674_v36  ;;  %v775_v48 = vadd.f32 %v774_v44, %v773_v42  ;;  %v683_v18 = vsel %vm637_vm3, %v2028_v55, 0.0  ;;  %v685_v26 = vsel %vm637_vm3, %v2035_v0, 0.0 }
 0x119   : > { %v782_v30 = vsel %vm637_vm3, %v729_v4, 0.0  ;;  %v2059_v31 = vadd.f32 %v1889_v9, %v1824_v25  ;;  %v784_v35 = vsel %vm637_vm3, %v730_v13, 0.0  ;;  %v2064_v23 = vadd.f32 %v1898_v17, %v1824_v25 }
 0x11a   : > { %v678_v59 = vadd.f32 %v677_v43, %v676_v47  ;;  %v777_v40 = vadd.f32 %v776_v54, %v775_v48  ;;  %v786_v42 = vsel %vm637_vm3, %v731_v12, 0.0  ;;  %v732_v43 = vmul.f32 %v2050_v16, %v2050_v16 }
 0x11b   : > { %v2071_v44 = vadd.f32 %v1824_v25, %v1934_v58  ;;  %v687_v47 = vsel %vm637_vm3, %v2050_v16, 0.0  ;;  %v733_v48 = vmul.f32 %v2059_v31, %v2059_v31  ;;  %v689_v17 = vsel %vm637_vm3, %v2059_v31, 0.0 }
 0x11c   : > { %v680_v8 = vadd.f32 %v679_v1, %v678_v59  ;;  %v779_v10 = vadd.f32 %v778_v52, %v777_v40  ;;  %v734_v59 = vmul.f32 %v2064_v23, %v2064_v23  ;;  %v788_v40 = vsel %vm637_vm3, %v732_v43, 0.0 }
 0x11d   : > { %v735_v58 = vmul.f32 %v2071_v44, %v2071_v44  ;;  %v2086_v1 = vadd.f32 %v1824_v25, %v1945_v5  ;;  %v691_v4 = vsel %vm637_vm3, %v2064_v23, 0.0  ;;  %v2095_v13 = vadd.f32 %v1929_v49, %v1824_v25 }
 0x11e   : > { %v682_v46 = vadd.f32 %v681_v50, %v680_v8  ;;  %v781_v21 = vadd.f32 %v780_v14, %v779_v10  ;;  %v693_v50 = vsel %vm637_vm3, %v2071_v44, 0.0  ;;  %v790_v10 = vsel %vm637_vm3, %v733_v48, 0.0 }
 0x11f   : > { %v792_v14 = vsel %vm637_vm3, %v734_v59, 0.0  ;;  %v794_v5 = vsel %vm637_vm3, %v735_v58, 0.0  ;;  %v737_v49 = vmul.f32 %v2095_v13, %v2095_v13 }
 0x120   : > { %v684_v32 = vadd.f32 %v683_v18, %v682_v46  ;;  %v783_v36 = vadd.f32 %v782_v30, %v781_v21  ;;  %v2101_v21 = vadd.f32 %v1938_v62, %v1824_v25 }
 0x122   : > { %v686_v39 = vadd.f32 %v685_v26, %v684_v32  ;;  %v785_v9 = vadd.f32 %v784_v35, %v783_v36  ;;  %v736_v26 = vmul.f32 %v2086_v1, %v2086_v1  ;;  %v695_v32 = vsel %vm637_vm3, %v2086_v1, 0.0 }
 0x123   : > { %v697_v36 = vsel %vm637_vm3, %v2095_v13, 0.0  ;;  %v699_v43 = vsel %vm637_vm3, %v2101_v21, 0.0 }
 0x124   : > { %v688_v52 = vadd.f32 %v687_v47, %v686_v39  ;;  %v787_v54 = vadd.f32 %v786_v42, %v785_v9  ;;  %v738_v42 = vmul.f32 %v2101_v21, %v2101_v21  ;;  %v796_v62 = vsel %vm637_vm3, %v736_v26, 0.0 }
 0x125   : > { %v798_v47 = vsel %vm637_vm3, %v737_v49, 0.0 }
 0x126   : > { %v690_v60 = vadd.f32 %v689_v17, %v688_v52  ;;  %v789_v8 = vadd.f32 %v788_v40, %v787_v54  ;;  %v800_v17 = vsel %vm637_vm3, %v738_v42, 0.0 }
 0x128   : > { %v692_v46 = vadd.f32 %v691_v4, %v690_v60  ;;  %v791_v12 = vadd.f32 %v790_v10, %v789_v8 }
 0x12a   : > { %v694_v18 = vadd.f32 %v693_v50, %v692_v46  ;;  %v793_v30 = vadd.f32 %v792_v14, %v791_v12 }
 0x12c   : > { %v696_v35 = vadd.f32 %v695_v32, %v694_v18  ;;  %v795_v39 = vadd.f32 %v794_v5, %v793_v30 }
 0x12e   : > { %v698_v25 = vadd.f32 %v697_v36, %v696_v35  ;;  %v797_v9 = vadd.f32 %v796_v62, %v795_v39  ;;  %v963_v62 = vld [vmem:[%s273_s18] sm:$0x1] }
 0x130   : > { %v700_v48 = vadd.f32 %v699_v43, %v698_v25  ;;  %v799_v52 = vadd.f32 %v798_v47, %v797_v9 }
 0x132   : > { %v701_v54 = vrot.slane %v700_v48, 4  ;;  %v801_v59 = vadd.f32 %v800_v17, %v799_v52 }
 0x134   : > { %v702_v60 = vadd.f32 %v701_v54, %v700_v48  ;;  %v802_v40 = vrot.slane %v801_v59, 4  ;;  %v965_v48 = vld [vmem:[%s276_s23] sm:$0x1] }
 0x136   : > { %v703_v58 = vrot.slane %v702_v60, 2  ;;  %v803_v4 = vadd.f32 %v802_v40, %v801_v59 }
 0x138   : > { %v704_v8 = vadd.f32 %v703_v58, %v702_v60  ;;  %v804_v50 = vrot.slane %v803_v4, 2 }
 0x13a   : > { %v705_v10 = vrot.slane %v704_v8, 1  ;;  %v805_v46 = vadd.f32 %v804_v50, %v803_v4 }
 0x13c   : > { %v706_v14 = vadd.f32 %v705_v10, %v704_v8  ;;  %v806_v12 = vrot.slane %v805_v46, 1 }
 0x13e   : > { %1521 = vmatmul.mubr.msk.f32.vlgmr.msra.gmra.mrb[12].mxu1 %vm637_vm3, %v706_v14  ;;  %v807_v18 = vadd.f32 %v806_v12, %v805_v46 }
 0x13f   : > { %1535 = vmatpush3.bf16.msra.mxu1 %v1816_v22  ;;  %1527 = vmatprep.mubr.msk.f32.mxu1 %vm1713_vm2, %v1714_v24  ;;  %v968_v22 = vlaneseq }
 0x141   : > { %v969_v24 = vshrl.u32 %v968_v22, 7 }
 0x142   : > { %1528 = vmatmul.mubr.msk.f32.vlgmr.msra.gmra.mrb[14].mxu1 %vm637_vm3, %v807_v18 }
 0x143   : > { %v970_v43 = vsub.s32 0, %v969_v24 }
 0x211   : > { %v879_v5 = vpop.f32.mrb[12].mxu1 }
 0x212   : > { %v956_v26 = vmul.f32 0.001953125, %v879_v5  ;;  %v1522_v30 = vpop.f32.mrb[13].mxu1 }
 0x214   : > { %v958_v49 = vmul.f32 %v956_v26, %v956_v26 }
 0x215   : > { %v952_v32 = vpop.f32.mrb[14].mxu1 }
 0x216   : > { %v957_v35 = vmul.f32 0.001953125, %v952_v32  ;;  %v1529_v36 = vpop.f32.mrb[15].mxu1 }
 0x218   : > { %v959_v39 = vsub.f32 %v957_v35, %v958_v49 }
 0x21a   : > { %v960_v42 = vmax.f32 %v959_v39, 0.0 }
 0x21c   : > { %v961_v25 = vadd.f32 1e-05, %v960_v42 }
 0x21e   : > { %1574 = vrsqrt.f32 %v961_v25 }
 0x228   : > { %v1575_v9 = vpop.eup %1574 }
 0x229   : > { %v964_v47 = vmul.f32 %v1575_v9, %v963_v62 }
 0x22b   : > { %v966_v52 = vmul.f32 %v964_v47, %v956_v26  ;;  %v971_v17 = vrot.slane %v964_v47, %v970_v43 }
 0x22d   : > { %v967_v54 = vsub.f32 %v965_v48, %v966_v52  ;;  %v972_v59 = vmul.f32 %v971_v17, %v1830_v29  ;;  %v973_v60 = vmul.f32 %v971_v17, %v1838_v34  ;;  %v974_v40 = vmul.f32 %v971_v17, %v1827_v28 }
 0x22e   : > { %v975_v58 = vmul.f32 %v971_v17, %v1835_v33  ;;  %v976_v4 = vmul.f32 %v971_v17, %v1864_v53  ;;  %v977_v8 = vmul.f32 %v971_v17, %v1877_v63  ;;  %v978_v50 = vmul.f32 %v971_v17, %v1869_v57 }
 0x22f   : > { %v979_v10 = vmul.f32 %v971_v17, %v1880_v2  ;;  %v980_v46 = vmul.f32 %v971_v17, %v1903_v20  ;;  %v981_v14 = vmul.f32 %v971_v17, %v1916_v37  ;;  %v982_v29 = vmul.f32 %v971_v17, %v1909_v27 }
 0x230   : > { %v983_v34 = vmul.f32 %v971_v17, %v1920_v41  ;;  %v984_v28 = vmul.f32 %v971_v17, %v1943_v3  ;;  %v985_v33 = vmul.f32 %v971_v17, %v1956_v15  ;;  %v986_v53 = vmul.f32 %v971_v17, %v1949_v7 }
 0x231   : > { %v987_v63 = vmul.f32 %v971_v17, %v1960_v19  ;;  %v988_v57 = vmul.f32 %v971_v17, %v1977_v51  ;;  %v989_v2 = vmul.f32 %v971_v17, %v1992_v6  ;;  %v990_v20 = vmul.f32 %v971_v17, %v1981_v56 }
 0x232   : > { %v991_v37 = vmul.f32 %v971_v17, %v1996_v11  ;;  %v992_v27 = vmul.f32 %v971_v17, %v1985_v61  ;;  %v993_v41 = vmul.f32 %v971_v17, %v2014_v38  ;;  %v994_v3 = vmul.f32 %v971_v17, %v2023_v45 }
 0x233   : > { %v995_v15 = vmul.f32 %v971_v17, %v2028_v55  ;;  %v996_v7 = vmul.f32 %v971_v17, %v2035_v0  ;;  %v997_v19 = vmul.f32 %v971_v17, %v2050_v16  ;;  %v998_v51 = vmul.f32 %v971_v17, %v2059_v31 }
 0x234   : > { %v999_v6 = vmul.f32 %v971_v17, %v2064_v23  ;;  %v1008_v12 = vrot.slane %v967_v54, %v970_v43  ;;  %v1000_v56 = vmul.f32 %v971_v17, %v2071_v44  ;;  %v1001_v11 = vmul.f32 %v971_v17, %v2086_v1 }
 0x235   : > { %v1002_v61 = vmul.f32 %v971_v17, %v2095_v13  ;;  %v1003_v38 = vmul.f32 %v971_v17, %v2101_v21 }
 0x236   : > { %v2163_v45 = vadd.f32 %v1008_v12, %v972_v59  ;;  %v2165_v55 = vadd.f32 %v1008_v12, %v973_v60  ;;  %v2167_v0 = vadd.f32 %v1008_v12, %v974_v40  ;;  %v2169_v16 = vadd.f32 %v1008_v12, %v975_v58 }
 0x237   : > { %v2171_v31 = vadd.f32 %v1008_v12, %v976_v4  ;;  %v2173_v23 = vadd.f32 %v1008_v12, %v977_v8  ;;  %v2175_v18 = vadd.f32 %v1008_v12, %v978_v50  ;;  %v2177_v44 = vadd.f32 %v1008_v12, %v979_v10 }
 0x238   : > { %v2179_v1 = vadd.f32 %v1008_v12, %v980_v46  ;;  %v2181_v13 = vadd.f32 %v1008_v12, %v981_v14  ;;  %v2183_v21 = vadd.f32 %v1008_v12, %v982_v29  ;;  %v2185_v5 = vadd.f32 %v1008_v12, %v983_v34 }
 0x239   : > { %v2187_v26 = vadd.f32 %v1008_v12, %v984_v28  ;;  %v2189_v30 = vadd.f32 %v1008_v12, %v985_v33  ;;  %v2191_v32 = vadd.f32 %v1008_v12, %v986_v53  ;;  %v2193_v49 = vadd.f32 %v1008_v12, %v987_v63 }
 0x23a   : > { %v2195_v35 = vadd.f32 %v1008_v12, %v988_v57  ;;  %v2197_v36 = vadd.f32 %v1008_v12, %v989_v2  ;;  %v2199_v39 = vadd.f32 %v1008_v12, %v990_v20  ;;  %v2201_v42 = vadd.f32 %v1008_v12, %v991_v37 }
 0x23b   : > { %v2203_v25 = vadd.f32 %v1008_v12, %v992_v27  ;;  %v2205_v22 = vadd.f32 %v1008_v12, %v993_v41  ;;  %v2207_v24 = vadd.f32 %v1008_v12, %v994_v3  ;;  %v2209_v62 = vadd.f32 %v1008_v12, %v995_v15 }
 0x23c   : > { %v2211_v43 = vadd.f32 %v1008_v12, %v996_v7  ;;  %v2213_v9 = vadd.f32 %v1008_v12, %v997_v19  ;;  %v2215_v47 = vadd.f32 %v1008_v12, %v998_v51  ;;  %v2217_v48 = vadd.f32 %v1008_v12, %v999_v6 }
 0x23d   : > { %v2219_v52 = vadd.f32 %v1008_v12, %v1000_v56  ;;  %v2221_v17 = vadd.f32 %v1008_v12, %v1001_v11  ;;  %v2223_v54 = vadd.f32 %v1008_v12, %v1002_v61  ;;  %v2225_v59 = vadd.f32 %v1008_v12, %v1003_v38 }
 0x23e   : > { %v1419_v60 = vmul.f32 -1.442695, %v2163_v45  ;;  %v1420_v40 = vmul.f32 -1.442695, %v2165_v55  ;;  %v1421_v58 = vmul.f32 -1.442695, %v2167_v0 }
 0x23f   : > { %2409 = vst [vmem:[#allocation2_spill] sm:$0xff] %v2223_v54  ;;  %2410 = vst [vmem:[#allocation3_spill] sm:$0xff] %v2225_v59  ;;  %v1422_v4 = vmul.f32 -1.442695, %v2169_v16  ;;  %v1423_v8 = vmul.f32 -1.442695, %v2171_v31 }
 0x240   : > { %1576 = vpow2.f32 %v1419_v60  ;;  %v1424_v50 = vmul.f32 -1.442695, %v2173_v23  ;;  %v1425_v10 = vmul.f32 -1.442695, %v2175_v18  ;;  %v1426_v46 = vmul.f32 -1.442695, %v2177_v44 }
 0x241   : > { %1578 = vpow2.f32 %v1420_v40  ;;  %v1427_v14 = vmul.f32 -1.442695, %v2179_v1  ;;  %v1428_v29 = vmul.f32 -1.442695, %v2181_v13  ;;  %v1429_v34 = vmul.f32 -1.442695, %v2183_v21 }
 0x242   : > { %1580 = vpow2.f32 %v1421_v58  ;;  %v1430_v28 = vmul.f32 -1.442695, %v2185_v5  ;;  %v1431_v33 = vmul.f32 -1.442695, %v2187_v26  ;;  %v1432_v53 = vmul.f32 -1.442695, %v2189_v30 }
 0x243   : > { %1582 = vpow2.f32 %v1422_v4  ;;  %v1433_v57 = vmul.f32 -1.442695, %v2191_v32  ;;  %v1434_v20 = vmul.f32 -1.442695, %v2193_v49  ;;  %v1435_v27 = vmul.f32 -1.442695, %v2195_v35 }
 0x244   : > { %1584 = vpow2.f32 %v1423_v8  ;;  %v1436_v3 = vmul.f32 -1.442695, %v2197_v36  ;;  %v1437_v7 = vmul.f32 -1.442695, %v2199_v39  ;;  %v1438_v51 = vmul.f32 -1.442695, %v2201_v42 }
 0x245   : > { %1586 = vpow2.f32 %v1424_v50  ;;  %v1439_v12 = vmul.f32 -1.442695, %v2203_v25  ;;  %v1440_v11 = vmul.f32 -1.442695, %v2205_v22  ;;  %v1441_v38 = vmul.f32 -1.442695, %v2207_v24 }
 0x246   : > { %1588 = vpow2.f32 %v1425_v10  ;;  %v1442_v40 = vmul.f32 -1.442695, %v2209_v62  ;;  %v1443_v4 = vmul.f32 -1.442695, %v2211_v43  ;;  %v1444_v50 = vmul.f32 -1.442695, %v2213_v9 }
 0x247   : > { %1590 = vpow2.f32 %v1426_v46  ;;  %v1445_v46 = vmul.f32 -1.442695, %v2215_v47 }
 0x248   : > { %1592 = vpow2.f32 %v1427_v14 }
 0x249   : > { %1594 = vpow2.f32 %v1428_v29  ;;  %v1446_v29 = vmul.f32 -1.442695, %v2217_v48 }
 0x24a   : > { %v1577_v63 = vpop.eup %1576  ;;  %1596 = vpow2.f32 %v1429_v34 }
 0x24b   : > { %v1579_v2 = vpop.eup %1578  ;;  %1598 = vpow2.f32 %v1430_v28  ;;  %v1447_v28 = vmul.f32 -1.442695, %v2219_v52 }
 0x24c   : > { %v1581_v37 = vpop.eup %1580  ;;  %1600 = vpow2.f32 %v1431_v33 }
 0x24d   : > { %v1583_v41 = vpop.eup %1582  ;;  %1602 = vpow2.f32 %v1432_v53  ;;  %v1448_v53 = vmul.f32 -1.442695, %v2221_v17 }
 0x24e   : > { %v1585_v15 = vpop.eup %1584  ;;  %1604 = vpow2.f32 %v1433_v57 }
 0x24f   : > { %v1587_v19 = vpop.eup %1586  ;;  %1606 = vpow2.f32 %v1434_v20  ;;  %v1449_v20 = vmul.f32 -1.442695, %v2223_v54  ;;  %v1142_v54 = vadd.f32 1.0, %v1585_v15 }
 0x250   : > { %v1589_v6 = vpop.eup %1588  ;;  %1608 = vpow2.f32 %v1435_v27 }
 0x251   : > { %v1591_v56 = vpop.eup %1590  ;;  %1610 = vpow2.f32 %v1436_v3  ;;  %v1450_v3 = vmul.f32 -1.442695, %v2225_v59  ;;  %v1143_v59 = vadd.f32 1.0, %v1587_v19 }
 0x252   : > { %v1593_v61 = vpop.eup %1592  ;;  %1612 = vpow2.f32 %v1437_v7 }
 0x253   : > { %v1595_v60 = vpop.eup %1594  ;;  %1614 = vpow2.f32 %v1438_v51  ;;  %v1138_v51 = vadd.f32 1.0, %v1577_v63 }
 0x254   : > { %v1597_v58 = vpop.eup %1596  ;;  %1616 = vpow2.f32 %v1439_v12  ;;  %v1147_v15 = vadd.f32 1.0, %v1595_v60 }
 0x255   : > { %v1599_v8 = vpop.eup %1598  ;;  %1618 = vpow2.f32 %v1440_v11  ;;  %v1139_v11 = vadd.f32 1.0, %v1579_v2  ;;  %v1144_v2 = vadd.f32 1.0, %v1589_v6  ;;  %v1148_v19 = vadd.f32 1.0, %v1597_v58 }
 0x256   : > { %v1601_v10 = vpop.eup %1600  ;;  %1620 = vpow2.f32 %v1441_v38  ;;  %v1149_v6 = vadd.f32 1.0, %v1599_v8 }
 0x257   : > { %v1603_v14 = vpop.eup %1602  ;;  %1622 = vpow2.f32 %v1442_v40  ;;  %v1140_v40 = vadd.f32 1.0, %v1581_v37  ;;  %v1145_v37 = vadd.f32 1.0, %v1591_v56  ;;  %v1150_v56 = vadd.f32 1.0, %v1601_v10 }
 0x258   : > { %v1605_v34 = vpop.eup %1604  ;;  %1624 = vpow2.f32 %v1443_v4 }
 0x259   : > { %v1607_v33 = vpop.eup %1606  ;;  %1626 = vpow2.f32 %v1444_v50  ;;  %v1141_v50 = vadd.f32 1.0, %v1583_v41  ;;  %v1146_v41 = vadd.f32 1.0, %v1593_v61 }
 0x25a   : > { %v1609_v57 = vpop.eup %1608  ;;  %1628 = vpow2.f32 %v1445_v46  ;;  %v1153_v58 = vadd.f32 1.0, %v1607_v33 }
 0x25b   : > { %v1611_v27 = vpop.eup %1610  ;;  %1630 = vpow2.f32 %v1446_v29 }
 0x25c   : > { %v1613_v7 = vpop.eup %1612  ;;  %1632 = vpow2.f32 %v1447_v28 }
 0x25d   : > { %v1615_v12 = vpop.eup %1614  ;;  %1634 = vpow2.f32 %v1448_v53  ;;  %v1156_v33 = vadd.f32 1.0, %v1613_v7 }
 0x25e   : > { %v2259_v38 = vpop.eup %1616  ;;  %1636 = vpow2.f32 %v1449_v20 }
 0x25f   : > { %v2261_v4 = vpop.eup %1618  ;;  %1638 = vpow2.f32 %v1450_v3 }
 0x260   : > { %v2263_v46 = vpop.eup %1620  ;;  %1640 = vrcp.f32 %v1138_v51 }
 0x261   : > { %v2265_v29 = vpop.eup %1622  ;;  %1642 = vrcp.f32 %v1139_v11 }
 0x262   : > { %v2267_v63 = vpop.eup %1624  ;;  %1644 = vrcp.f32 %v1140_v40 }
 0x263   : > { %v2269_v28 = vpop.eup %1626  ;;  %1646 = vrcp.f32 %v1141_v50  ;;  %v1154_v50 = vadd.f32 1.0, %v1609_v57  ;;  %v1157_v57 = vadd.f32 1.0, %v1615_v12 }
 0x264   : > { %v2271_v53 = vpop.eup %1628  ;;  %1648 = vrcp.f32 %v1142_v54  ;;  %v1151_v54 = vadd.f32 1.0, %v1603_v14 }
 0x265   : > { %v2273_v20 = vpop.eup %1630  ;;  %1650 = vrcp.f32 %v1143_v59  ;;  %v1152_v59 = vadd.f32 1.0, %v1605_v34 }
 0x266   : > { %v2275_v3 = vpop.eup %1632  ;;  %1652 = vrcp.f32 %v1144_v2 }
 0x267   : > { %v2277_v51 = vpop.eup %1634  ;;  %1654 = vrcp.f32 %v1145_v37  ;;  %v1155_v37 = vadd.f32 1.0, %v1611_v27  ;;  %v1158_v27 = vadd.f32 1.0, %v2259_v38 }
 0x268   : > { %v2280_v11 = vpop.eup %1636  ;;  %1656 = vrcp.f32 %v1146_v41 }
 0x269   : > { %v2282_v40 = vpop.eup %1638  ;;  %1658 = vrcp.f32 %v1147_v15 }
 0x26a   : > { %v1641_v61 = vpop.eup %1640  ;;  %1660 = vrcp.f32 %v1148_v19  ;;  %v1159_v19 = vadd.f32 1.0, %v2261_v4 }
 0x26b   : > { %v1643_v60 = vpop.eup %1642  ;;  %1662 = vrcp.f32 %v1149_v6  ;;  %v1234_v8 = vmul.f32 %v1641_v61, %v2163_v45  ;;  %v1160_v6 = vadd.f32 1.0, %v2263_v46  ;;  %v1163_v61 = vadd.f32 1.0, %v2269_v28 }
 0x26c   : > { %v1645_v10 = vpop.eup %1644  ;;  %1664 = vrcp.f32 %v1150_v56  ;;  %v1235_v14 = vmul.f32 %v1643_v60, %v2165_v55  ;;  %v1161_v56 = vadd.f32 1.0, %v2265_v29  ;;  %v1165_v60 = vadd.f32 1.0, %v2273_v20 }
 0x26d   : > { %v1647_v2 = vpop.eup %1646  ;;  %1666 = vrcp.f32 %v1151_v54  ;;  %v1236_v41 = vmul.f32 %v1645_v10, %v2167_v0  ;;  %1266 = vst.msk [vmem:[%s2287_s26] sm:$0xff] %vm637_vm3, %v1234_v8  ;;  %v1162_v54 = vadd.f32 1.0, %v2267_v63  ;;  %v1167_v8 = vadd.f32 1.0, %v2277_v51 }
 0x26e   : > { %v1649_v34 = vpop.eup %1648  ;;  %1668 = vrcp.f32 %v1152_v59  ;;  %v1237_v15 = vmul.f32 %v1647_v2, %v2169_v16  ;;  %1267 = vst.msk [vmem:[%s2287_s26 + $0x8] sm:$0xff] %vm637_vm3, %v1235_v14  ;;  %v1164_v59 = vadd.f32 1.0, %v2271_v53  ;;  %v1168_v10 = vadd.f32 1.0, %v2280_v11 }
 0x26f   : > { %v1651_v45 = vpop.eup %1650  ;;  %1670 = vrcp.f32 %v1153_v58  ;;  %v1238_v55 = vmul.f32 %v1649_v34, %v2171_v31  ;;  %1268 = vst.msk [vmem:[%s2287_s26 + $0x10] sm:$0xff] %vm637_vm3, %v1236_v41  ;;  %v1166_v58 = vadd.f32 1.0, %v2275_v3 }
 0x270   : > { %v1653_v0 = vpop.eup %1652  ;;  %1672 = vrcp.f32 %v1154_v50  ;;  %v1239_v7 = vmul.f32 %v1651_v45, %v2173_v23  ;;  %1269 = vst.msk [vmem:[%s2287_s26 + $0x18] sm:$0xff] %vm637_vm3, %v1237_v15  ;;  %v1169_v50 = vadd.f32 1.0, %v2282_v40 }
 0x271   : > { %v1655_v16 = vpop.eup %1654  ;;  %1674 = vrcp.f32 %v1155_v37  ;;  %v1240_v12 = vmul.f32 %v1653_v0, %v2175_v18  ;;  %1270 = vst.msk [vmem:[%s2287_s26 + $0x20] sm:$0xff] %vm637_vm3, %v1238_v55 }
 0x272   : > { %v1657_v31 = vpop.eup %1656  ;;  %1676 = vrcp.f32 %v1156_v33  ;;  %v1241_v38 = vmul.f32 %v1655_v16, %v2177_v44  ;;  %1271 = vst.msk [vmem:[%s2287_s26 + $0x28] sm:$0xff] %vm637_vm3, %v1239_v7  ;;  %v2411_v7 = vld [vmem:[#allocation2_spill] sm:$0xff] }
 0x273   : > { %v1659_v23 = vpop.eup %1658  ;;  %1678 = vrcp.f32 %v1157_v57  ;;  %v1242_v4 = vmul.f32 %v1657_v31, %v2179_v1  ;;  %1272 = vst.msk [vmem:[%s2287_s26 + $0x30] sm:$0xff] %vm637_vm3, %v1240_v12 }
 0x274   : > { %v1661_v18 = vpop.eup %1660  ;;  %1680 = vrcp.f32 %v1158_v27  ;;  %v1243_v46 = vmul.f32 %v1659_v23, %v2181_v13  ;;  %1273 = vst.msk [vmem:[%s2287_s26 + $0x38] sm:$0xff] %vm637_vm3, %v1241_v38 }
 0x275   : > { %v1663_v44 = vpop.eup %1662  ;;  %1682 = vrcp.f32 %v1159_v19  ;;  %v1244_v29 = vmul.f32 %v1661_v18, %v2183_v21  ;;  %1274 = vst.msk [vmem:[%s2287_s26 + $0x40] sm:$0xff] %vm637_vm3, %v1242_v4  ;;  %v2412_v19 = vld [vmem:[#allocation3_spill] sm:$0xff] }
 0x276   : > { %v1665_v1 = vpop.eup %1664  ;;  %1684 = vrcp.f32 %v1160_v6  ;;  %v1245_v63 = vmul.f32 %v1663_v44, %v2185_v5  ;;  %1275 = vst.msk [vmem:[%s2287_s26 + $0x48] sm:$0xff] %vm637_vm3, %v1243_v46 }
 0x277   : > { %v1667_v13 = vpop.eup %1666  ;;  %1686 = vrcp.f32 %v1161_v56  ;;  %v1246_v28 = vmul.f32 %v1665_v1, %v2187_v26  ;;  %1276 = vst.msk [vmem:[%s2287_s26 + $0x50] sm:$0xff] %vm637_vm3, %v1244_v29 }
 0x278   : > { %v1669_v21 = vpop.eup %1668  ;;  %1688 = vrcp.f32 %v1162_v54  ;;  %v1247_v53 = vmul.f32 %v1667_v13, %v2189_v30  ;;  %1277 = vst.msk [vmem:[%s2287_s26 + $0x58] sm:$0xff] %vm637_vm3, %v1245_v63 }
 0x279   : > { %v1671_v5 = vpop.eup %1670  ;;  %1690 = vrcp.f32 %v1163_v61  ;;  %v1248_v20 = vmul.f32 %v1669_v21, %v2191_v32  ;;  %1278 = vst.msk [vmem:[%s2287_s26 + $0x60] sm:$0xff] %vm637_vm3, %v1246_v28 }
 0x27a   : > { %v1673_v26 = vpop.eup %1672  ;;  %1692 = vrcp.f32 %v1164_v59  ;;  %v1249_v3 = vmul.f32 %v1671_v5, %v2193_v49  ;;  %1279 = vst.msk [vmem:[%s2287_s26 + $0x68] sm:$0xff] %vm637_vm3, %v1247_v53 }
 0x27b   : > { %v1675_v30 = vpop.eup %1674  ;;  %1694 = vrcp.f32 %v1165_v60  ;;  %v1250_v51 = vmul.f32 %v1673_v26, %v2195_v35  ;;  %1280 = vst.msk [vmem:[%s2287_s26 + $0x70] sm:$0xff] %vm637_vm3, %v1248_v20 }
 0x27c   : > { %v1677_v32 = vpop.eup %1676  ;;  %1696 = vrcp.f32 %v1166_v58  ;;  %v1251_v11 = vmul.f32 %v1675_v30, %v2197_v36  ;;  %1281 = vst.msk [vmem:[%s2287_s26 + $0x78] sm:$0xff] %vm637_vm3, %v1249_v3 }
 0x27d   : > { %v1679_v49 = vpop.eup %1678  ;;  %1698 = vrcp.f32 %v1167_v8  ;;  %v1252_v14 = vmul.f32 %v1677_v32, %v2199_v39  ;;  %1282 = vst.msk [vmem:[%s2287_s26 + $0x80] sm:$0xff] %vm637_vm3, %v1250_v51 }
 0x27e   : > { %v1681_v40 = vpop.eup %1680  ;;  %1700 = vrcp.f32 %v1168_v10  ;;  %v1253_v35 = vmul.f32 %v1679_v49, %v2201_v42  ;;  %1283 = vst.msk [vmem:[%s2287_s26 + $0x88] sm:$0xff] %vm637_vm3, %v1251_v11 }
 0x27f   : > { %v1683_v2 = vpop.eup %1682  ;;  %1702 = vrcp.f32 %v1169_v50  ;;  %v1254_v36 = vmul.f32 %v1681_v40, %v2203_v25  ;;  %1284 = vst.msk [vmem:[%s2287_s26 + $0x90] sm:$0xff] %vm637_vm3, %v1252_v14 }
 0x280   : > { %v1685_v37 = vpop.eup %1684  ;;  %v1255_v39 = vmul.f32 %v1683_v2, %v2205_v22  ;;  %1285 = vst.msk [vmem:[%s2287_s26 + $0x98] sm:$0xff] %vm637_vm3, %v1253_v35 }
 0x281   : > { %v1687_v41 = vpop.eup %1686  ;;  %v1256_v34 = vmul.f32 %v1685_v37, %v2207_v24  ;;  %1286 = vst.msk [vmem:[%s2287_s26 + $0xa0] sm:$0xff] %vm637_vm3, %v1254_v36 }
 0x282   : > { %v1689_v42 = vpop.eup %1688  ;;  %v1257_v33 = vmul.f32 %v1687_v41, %v2209_v62  ;;  %1287 = vst.msk [vmem:[%s2287_s26 + $0xa8] sm:$0xff] %vm637_vm3, %v1255_v39 }
 0x283   : > { %v1691_v25 = vpop.eup %1690  ;;  %v1258_v15 = vmul.f32 %v1689_v42, %v2211_v43  ;;  %1288 = vst.msk [vmem:[%s2287_s26 + $0xb0] sm:$0xff] %vm637_vm3, %v1256_v34 }
 0x284   : > { %v1693_v22 = vpop.eup %1692  ;;  %v1259_v45 = vmul.f32 %v1691_v25, %v2213_v9  ;;  %1289 = vst.msk [vmem:[%s2287_s26 + $0xb8] sm:$0xff] %vm637_vm3, %v1257_v33 }
 0x285   : > { %v1695_v24 = vpop.eup %1694  ;;  %v1260_v57 = vmul.f32 %v1693_v22, %v2215_v47  ;;  %1290 = vst.msk [vmem:[%s2287_s26 + $0xc0] sm:$0xff] %vm637_vm3, %v1258_v15 }
 0x286   : > { %v1697_v62 = vpop.eup %1696  ;;  %v1261_v43 = vmul.f32 %v1695_v24, %v2217_v48  ;;  %1291 = vst.msk [vmem:[%s2287_s26 + $0xc8] sm:$0xff] %vm637_vm3, %v1259_v45 }
 0x287   : > { %v1699_v55 = vpop.eup %1698  ;;  %v1262_v0 = vmul.f32 %v1697_v62, %v2219_v52  ;;  %1292 = vst.msk [vmem:[%s2287_s26 + $0xd0] sm:$0xff] %vm637_vm3, %v1260_v57 }
 0x288   : > { %v1701_v9 = vpop.eup %1700  ;;  %v1263_v27 = vmul.f32 %v1699_v55, %v2221_v17  ;;  %1293 = vst.msk [vmem:[%s2287_s26 + $0xd8] sm:$0xff] %vm637_vm3, %v1261_v43 }
 0x289   : > { %v1703_v47 = vpop.eup %1702  ;;  %v1264_v16 = vmul.f32 %v1701_v9, %v2411_v7  ;;  %1294 = vst.msk [vmem:[%s2287_s26 + $0xe0] sm:$0xff] %vm637_vm3, %v1262_v0 }
 0x28a   : > { %v1265_v12 = vmul.f32 %v1703_v47, %v2412_v19  ;;  %1295 = vst.msk [vmem:[%s2287_s26 + $0xe8] sm:$0xff] %vm637_vm3, %v1263_v27 }
 0x28b   : > { %1296 = vst.msk [vmem:[%s2287_s26 + $0xf0] sm:$0xff] %vm637_vm3, %v1264_v16 }
 0x28c   : > { %1297 = vst.msk [vmem:[%s2287_s26 + $0xf8] sm:$0xff] %vm637_vm3, %v1265_v12 }
 0x28d PF: > { %s16_s21 = sadd.s32 1, %s1710_s21  }
 0x28e   : > { %p13_p5 = scmp.ge.s32.totalorder %s16_s21, 4  }
 0x290   :  { %15 = sbr.rel (!%p13_p5) target bundleno = 1 (0x1), region = 80 }

</bundles_post_ra>
